<compile_context>
chip_gen: v7x
topology: tpu7x:2x2x1
jax: 0.10.0
libtpu: 0.0.40
codegen_flags: <defaults>
</compile_context>

<pallas_src>
import math

import jax
import jax.numpy as jnp
from jax.experimental import pallas as pl
from jax.experimental.pallas import tpu as pltpu


def _round_up(a, b):
    return -(-a // b) * b


def _pick_tile(n_packed, tn_max):
    """Large tiles, but keep >= 2 grid steps when there is enough work
    (megacore sharding on v7x); tile must be a multiple of 8 sublanes."""
    tn_max = max(8, (int(tn_max) // 8) * 8)
    t = min(tn_max, _round_up(max(-(-n_packed // 2), 1), 8))
    return max(8, t)


def _build_encoding_tables(emb, in_dim, out_dim):
    """S: (in_dim, out_dim), P: (out_dim,) such that sin(x @ S + P) reproduces
    the module's per-dim [sin(x_d*emb) | cos(x_d*emb)] layout exactly."""
    L = emb.shape[0]
    emb = emb.astype(jnp.float32)
    eye = jnp.eye(in_dim, dtype=jnp.float32)
    s = jnp.einsum("de,l->del", eye, emb)                      # (in_dim, in_dim, L)
    s = jnp.concatenate([s, s], axis=-1).reshape(in_dim, out_dim)
    p = jnp.tile(
        jnp.concatenate([jnp.zeros((L,), jnp.float32),
                         jnp.full((L,), 0.5 * math.pi, jnp.float32)]), in_dim)
    return s, p


def _block_diag2(a):
    r, c = a.shape
    out = jnp.zeros((2 * r, 2 * c), a.dtype)
    out = out.at[:r, :c].set(a)
    out = out.at[r:, c:].set(a)
    return out


def _posemb_linear_kernel(x_ref, s_ref, p_ref, wt_ref, b_ref, o_ref):
    # x: (tile, 2*in_dim), S: (2*in_dim, 2*out_dim), P/b: (1, 2*out_dim)
    z = jnp.dot(x_ref[...], s_ref[...], preferred_element_type=jnp.float32)
    feat = jnp.sin(z + p_ref[...])                             # (tile, 2*out_dim), lane-dense
    y = jnp.dot(feat, wt_ref[...], preferred_element_type=jnp.float32)
    o_ref[...] = (y + b_ref[...]).astype(o_ref.dtype)


def _posemb_kernel(x_ref, s_ref, p_ref, o_ref):
    z = jnp.dot(x_ref[...], s_ref[...], preferred_element_type=jnp.float32)
    o_ref[...] = jnp.sin(z + p_ref[...]).astype(o_ref.dtype)


def nerf_pos_emb_linear(x, emb, weight, bias, *, in_dim, out_dim,
                        angular=False, cat_input=False, tn=2048):
    """x: (..., in_dim). emb: (L,) fixed frequency buffer (== module's self.emb).
    weight: (out_dim, out_dim) or None (no_linear). bias: (out_dim,) or None.
    tn: max packed-row tile (sweep parameter)."""
    assert x.shape[-1] == in_dim, "size must match"
    assert out_dim % (2 * in_dim) == 0, "dimension must be dividable"
    lead = x.shape[:-1]
    n_rows = math.prod(lead) if lead else 1

    xf = x.reshape(n_rows, in_dim).astype(jnp.float32)
    if angular:
        # arccos has no guaranteed Mosaic lowering; it is a tiny elementwise op
        # on the (n, in_dim) input, so apply it before the kernel (same math).
        xf = jnp.arccos(jnp.clip(xf, -1.0 + 1e-6, 1.0 - 1e-6))

    # Pack two logical rows per kernel row -> (.., 2*out_dim) lane-dense blocks.
    n_packed = _round_up(n_rows, 2) // 2
    tile = _pick_tile(n_packed, tn)
    n_pad_packed = _round_up(n_packed, tile)
    pad_rows = 2 * n_pad_packed - n_rows
    if pad_rows:
        xf = jnp.pad(xf, ((0, pad_rows), (0, 0)))
    x_packed = xf.reshape(n_pad_packed, 2 * in_dim)

    s, p = _build_encoding_tables(emb, in_dim, out_dim)
    s2 = _block_diag2(s)                                       # (2*in_dim, 2*out_dim)
    p2 = jnp.concatenate([p, p]).reshape(1, 2 * out_dim)

    x_spec = pl.BlockSpec((tile, 2 * in_dim), lambda i: (i, 0))
    s_spec = pl.BlockSpec((2 * in_dim, 2 * out_dim), lambda i: (0, 0))
    p_spec = pl.BlockSpec((1, 2 * out_dim), lambda i: (0, 0))
    out_spec = pl.BlockSpec((tile, 2 * out_dim), lambda i: (i, 0))

    use_linear = weight is not None
    if use_linear:
        b = bias if bias is not None else jnp.zeros((out_dim,), jnp.float32)
        wt2 = _block_diag2(weight.T.astype(jnp.float32))       # (2*out_dim, 2*out_dim)
        b2 = jnp.concatenate([b, b]).astype(jnp.float32).reshape(1, 2 * out_dim)
        kernel = _posemb_linear_kernel
        in_specs = [x_spec, s_spec, p_spec,
                    pl.BlockSpec((2 * out_dim, 2 * out_dim), lambda i: (0, 0)),
                    pl.BlockSpec((1, 2 * out_dim), lambda i: (0, 0))]
        args = (x_packed, s2, p2, wt2, b2)
    else:
        kernel = _posemb_kernel
        in_specs = [x_spec, s_spec, p_spec]
        args = (x_packed, s2, p2)

    y = pl.pallas_call(
        kernel,
        out_shape=jax.ShapeDtypeStruct((n_pad_packed, 2 * out_dim), jnp.float32),
        grid_spec=pltpu.PrefetchScalarGridSpec(
            num_scalar_prefetch=0,
            grid=(n_pad_packed // tile,),
            in_specs=in_specs,
            out_specs=out_spec,
        ),
        compiler_params=pltpu.CompilerParams(
            dimension_semantics=("parallel",)),
    )(*args)

    # Unpack: (n_pad_packed, 2*out_dim) is row-major identical to (2*n_pad, out_dim).
    y = y.reshape(2 * n_pad_packed, out_dim)[:n_rows]
    y = y.reshape(*lead, out_dim).astype(x.dtype)
    if cat_input:
        # TODO(synk): cat_input kept as XLA glue; out_dim+in_dim=68 lanes is not
        # 128-aligned, so fusing it into the kernel store needs a padded block.
        y = jnp.concatenate([y, x], axis=-1)
    return y


def _reference(x, emb, weight, bias, *, in_dim, out_dim, angular=False,
               cat_input=False):
    lead = x.shape[:-1]
    inputs = x
    h = x.astype(jnp.float32)
    if angular:
        h = jnp.arccos(jnp.clip(h, -1.0 + 1e-6, 1.0 - 1e-6))
    xe = h[..., :, None] * emb.astype(jnp.float32)
    f = jnp.concatenate([jnp.sin(xe), jnp.cos(xe)], axis=-1).reshape(*lead, out_dim)
    if weight is not None:
        b = bias if bias is not None else 0.0
        f = f @ weight.T.astype(jnp.float32) + b
    f = f.astype(x.dtype)
    if cat_input:
        f = jnp.concatenate([f, inputs], axis=-1)
    return f


if __name__ == "__main__":
    # Module config (matches NeRFPosEmbLinear(in_dim=4, out_dim=64)).
    in_dim, out_dim = 4, 64
    L = out_dim // 2 // in_dim                                 # = 8

    key = jax.random.PRNGKey(0)
    kx, kw = jax.random.split(key)
    bound = math.sqrt(6.0 / (out_dim + out_dim))               # xavier_uniform_
    weight = jax.random.uniform(kw, (out_dim, out_dim), jnp.float32,
                                minval=-bound, maxval=bound)
    bias = jnp.zeros((out_dim,), jnp.float32)                  # constant_(0.0)

    # Small example input: (batch=2, seq=64, in_dim=4) -> 128 logical rows.
    x = jax.random.uniform(kx, (2, 64, in_dim), jnp.float32,
                           minval=-1.0, maxval=1.0)

    def make_emb(angular, no_pi=False):
        e = jnp.exp(jnp.arange(L, dtype=jnp.float32) * math.log(2.0))
        if (not angular) and (not no_pi):
            e = e * math.pi
        return e

    # (angular, cat_input, use_linear, atol) -- covers all code paths.
    checks = [
        (False, False, True, 1e-3),    # canonical NeRFPosEmbLinear(4, 64)
        (False, True, False, 1e-3),    # no_linear=True, cat_input=True
        (True, False, False, 2e-3),    # angular=True (no-pi emb)
    ]
    for angular, cat_input, use_linear, atol in checks:
        emb = make_emb(angular)
        w = weight if use_linear else None
        b = bias if use_linear else None
        out = nerf_pos_emb_linear(x, emb, w, b, in_dim=in_dim, out_dim=out_dim,
                                  angular=angular, cat_input=cat_input)
        out = jax.block_until_ready(out)
        ref = _reference(x, emb, w, b, in_dim=in_dim, out_dim=out_dim,
                         angular=angular, cat_input=cat_input)
        assert out.shape == ref.shape, (out.shape, ref.shape)
        err = float(jnp.max(jnp.abs(out - ref)))
        assert err < atol, (angular, cat_input, use_linear, err)

    print("KERNEL_OK")
</pallas_src>

<mosaic_0001>
module attributes {stable_mosaic.version = 11 : i64} {
  func.func @_posemb_linear_kernel(%arg0: i32, %arg1: memref<32x8xf32, #tpu.memory_space<vmem>>, %arg2: memref<8x128xf32, #tpu.memory_space<vmem>>, %arg3: memref<1x128xf32, #tpu.memory_space<vmem>>, %arg4: memref<128x128xf32, #tpu.memory_space<vmem>>, %arg5: memref<1x128xf32, #tpu.memory_space<vmem>>, %arg6: memref<32x128xf32, #tpu.memory_space<vmem>>) attributes {dimension_semantics = [#tpu.dimension_semantics<parallel>], iteration_bounds = array<i64: 2>, scalar_prefetch = 0 : i64, scratch_operands = 0 : i64, tpu.core_type = #tpu.core_type<tc>, window_params = [{transform_indices = @transform_0, window_bounds = array<i64: 32, 8>}, {pipeline_mode = #tpu.pipeline_mode<synchronous>, transform_indices = @transform_1, window_bounds = array<i64: 8, 128>}, {pipeline_mode = #tpu.pipeline_mode<synchronous>, transform_indices = @transform_2, window_bounds = array<i64: 1, 128>}, {pipeline_mode = #tpu.pipeline_mode<synchronous>, transform_indices = @transform_3, window_bounds = array<i64: 128, 128>}, {pipeline_mode = #tpu.pipeline_mode<synchronous>, transform_indices = @transform_4, window_bounds = array<i64: 1, 128>}, {transform_indices = @transform_5, window_bounds = array<i64: 32, 128>}]} {
    %c0 = arith.constant 0 : index
    %c0_0 = arith.constant 0 : index
    %0 = vector.load %arg1[%c0, %c0_0] : memref<32x8xf32, #tpu.memory_space<vmem>>, vector<32x8xf32>
    %c0_1 = arith.constant 0 : index
    %c0_2 = arith.constant 0 : index
    %1 = vector.load %arg2[%c0_1, %c0_2] : memref<8x128xf32, #tpu.memory_space<vmem>>, vector<8x128xf32>
    %cst = arith.constant dense<0.000000e+00> : vector<32x128xf32>
    %2 = tpu.matmul %0, %1, %cst {dimension_numbers = #tpu.dot_dimension_numbers<[1], [0], [0], [1], [0, 0, 1, 1], [], []>} : vector<32x8xf32>, vector<8x128xf32>, vector<32x128xf32> -> vector<32x128xf32>
    %c0_3 = arith.constant 0 : index
    %c0_4 = arith.constant 0 : index
    %3 = vector.load %arg3[%c0_3, %c0_4] : memref<1x128xf32, #tpu.memory_space<vmem>>, vector<1x128xf32>
    %4 = vector.broadcast %3 : vector<1x128xf32> to vector<32x128xf32>
    %5 = arith.addf %2, %4 : vector<32x128xf32>
    %6 = math.sin %5 : vector<32x128xf32>
    %c0_5 = arith.constant 0 : index
    %c0_6 = arith.constant 0 : index
    %7 = vector.load %arg4[%c0_5, %c0_6] : memref<128x128xf32, #tpu.memory_space<vmem>>, vector<128x128xf32>
    %cst_7 = arith.constant dense<0.000000e+00> : vector<32x128xf32>
    %8 = tpu.matmul %6, %7, %cst_7 {dimension_numbers = #tpu.dot_dimension_numbers<[1], [0], [0], [1], [0, 0, 1, 1], [], []>} : vector<32x128xf32>, vector<128x128xf32>, vector<32x128xf32> -> vector<32x128xf32>
    %c0_8 = arith.constant 0 : index
    %c0_9 = arith.constant 0 : index
    %9 = vector.load %arg5[%c0_8, %c0_9] : memref<1x128xf32, #tpu.memory_space<vmem>>, vector<1x128xf32>
    %10 = vector.broadcast %9 : vector<1x128xf32> to vector<32x128xf32>
    %11 = arith.addf %8, %10 : vector<32x128xf32>
    %c0_10 = arith.constant 0 : index
    %c0_11 = arith.constant 0 : index
    %12 = vector.load %arg6[%c0_10, %c0_11] : memref<32x128xf32, #tpu.memory_space<vmem>>, vector<32x128xf32>
    tpu.vector_store %arg6[%c0_10, %c0_11], %11 {strides = array<i32>} : memref<32x128xf32, #tpu.memory_space<vmem>>, vector<32x128xf32>,
    return
  }
  func.func @transform_0(%arg0: i32) -> (i32, i32) {
    %c0_i32 = arith.constant 0 : i32
    %c0_i32_0 = arith.constant 0 : i32
    return %arg0, %c0_i32 : i32, i32
  }
  func.func @transform_1(%arg0: i32) -> (i32, i32) {
    %c0_i32 = arith.constant 0 : i32
    %c0_i32_0 = arith.constant 0 : i32
    %c0_i32_1 = arith.constant 0 : i32
    return %c0_i32, %c0_i32_0 : i32, i32
  }
  func.func @transform_2(%arg0: i32) -> (i32, i32) {
    %c0_i32 = arith.constant 0 : i32
    %c0_i32_0 = arith.constant 0 : i32
    %c0_i32_1 = arith.constant 0 : i32
    return %c0_i32, %c0_i32_0 : i32, i32
  }
  func.func @transform_3(%arg0: i32) -> (i32, i32) {
    %c0_i32 = arith.constant 0 : i32
    %c0_i32_0 = arith.constant 0 : i32
    %c0_i32_1 = arith.constant 0 : i32
    return %c0_i32, %c0_i32_0 : i32, i32
  }
  func.func @transform_4(%arg0: i32) -> (i32, i32) {
    %c0_i32 = arith.constant 0 : i32
    %c0_i32_0 = arith.constant 0 : i32
    %c0_i32_1 = arith.constant 0 : i32
    return %c0_i32, %c0_i32_0 : i32, i32
  }
  func.func @transform_5(%arg0: i32) -> (i32, i32) {
    %c0_i32 = arith.constant 0 : i32
    %c0_i32_0 = arith.constant 0 : i32
    return %arg0, %c0_i32 : i32, i32
  }
}

</mosaic_0001>

<bundles_post_ra>
// kernel: tpu_custom_call.1
= control target key start
LH: loop header
LB: loop body
LE: loop exit
PB: predicated region body
PF: predicated region fallthrough
CT: control target
= control target key end

     0   :  { %10 = vsyncpa [#allocation3], 0  ;;  %s1795_s0 = inlined_call_operand.vmem [shape: f32[64,8], index: 0, kind: input, shape index: {}]   ;;  %s1796_s1 = inlined_call_operand.vmem [shape: f32[8,128], index: 1, kind: input, shape index: {}]   ;;  %s1797_s2 = inlined_call_operand.vmem [shape: f32[1,128], index: 2, kind: input, shape index: {}]   ;;  %s1798_s3 = inlined_call_operand.hbm [shape: f32[128,128], index: 3, kind: input, shape index: {}]   ;;  %s1799_s4 = inlined_call_operand.vmem [shape: f32[1,128], index: 4, kind: input, shape index: {}]   ;;  %s1800_s5 = inlined_call_operand.hbm [shape: f32[64,128], index: 5, kind: output, shape index: {}]  }
   0x1   :  { %11 = vsyncpa [#allocation4], 0 }
   0x2   :  { %13 = vsyncpa [#allocation4 + $0x1], 0  ;;  %s1353_s18 = smov 0   ;;  %s1355_s19 = smov 0  }
   0x3   :  { %s1357_s20 = smov 0   ;;  %s1359_s21 = smov 0  }
   0x4 LB: > { %s1374_s22 = sadd.s32 4294967295, %s1309_s21   ;;  %s967_s23 = sadd.s32 4294967294, %s1309_s21   ;;  %s1309_s21 = sphi %s1359_s21, %s1822_s21   ;;  %s1305_s20 = sphi %s1357_s20, %s1821_s20   ;;  %s1301_s19 = sphi %s1355_s19, %s1820_s19   ;;  %s1297_s18 = sphi %s1353_s18, %s1819_s18  }
   0x5   : > { %s1378_s24 = sadd.s32 1, %s1309_s21   ;;  %s136_s25 = sadd.s32 1, %s1305_s20 }
   0x6   : > { %s133_s26 = ssub.s32 %s1309_s21, %s1378_s24  ;;  %p146_p0 = scmp.ne.s32.totalorder %s1305_s20, %s1301_s19 }
   0x7   : > { %p134_p1 = scmp.eq.s32.totalorder %s133_s26, 0  ;;  %p147_p2 = scmp.eq.s32.totalorder %s1374_s22, 1 }
   0x8   : > { %p152_p3 = scmp.ne.s32.totalorder %s1301_s19, %s1297_s18  ;;  %p153_p4 = scmp.eq.s32.totalorder %s967_s23, 1 }
   0x9   : > { %s1389_s27 = scalar_select %p134_p1, %s1305_s20, %s136_s25  }
   0xa   : > { %p1391_p5 = por %p147_p2, %p146_p0  ;;  %p1395_p6 = por %p153_p4, %p152_p3 }
   0xb   : > { %p968_p7 = scmp.ge.s32.totalorder %s1309_s21, 1  ;;  %p160_p8 = scmp.lt.s32.totalorder %s1309_s21, 3 }
   0xc   : > { %s1804_s28 = scalar_select %p1391_p5, 1, 0 }
   0xd   : > { %s1805_s29 = scalar_select %p1395_p6, 1, 0 }
   0xe   : > { %p1801_p9 = scmp.eq.s32.totalorder %s1374_s22, 0  ;;  %p1402_p10 = pnand %p968_p7, %p160_p8 }
   0xf   : > { %s1311_s6 = smov [#allocation2]   ;;  %s1215_s11 = scalar_lea.hbm %s1798_s3, 2048 }
  0x10   : > { %s1806_s30 = scalar_select %p1402_p10, 1, 0 }
  0x11   : > { %s178_s7 = sshll.u32 %s1311_s6, 4  ;;  %p1145_p11 = pneg %p1402_p10  ;;  %s179_s7 = int_to_ptr.vmem [resolvable:$true] %s178_s7 }
  0x12   : > { %p1216_p13 = scmp.ne.s32.totalorder %s1798_s3, %s1215_s11  ;;  %p1222_p3 = scmp.lt.u32.totalorder %s1215_s11, %s1798_s3 }
  0x13   : > { %p1410_p12 = pnand %p1801_p9, %p1145_p11 }
  0x15   : > { %p1217_p0 = pneg %p1410_p12 }
  0x17   : > { %p1218_p1 = pnand %p1217_p0, %p1216_p13 }
  0x19   : > { %p1219_p2 = pneg %p1218_p1 }
  0x1b   : > { %p1224_p4 = pnand %p1222_p3, %p1219_p2 }
  0x1d   : > { %1227 = shalt.err (!%p1224_p4)
}
  0x1e   : > { %s1228_s16 = scalar_lea.vmem %s179_s7, 2048  ;;  %p1236_p9 = scmp.lt.s32.totalorder %s179_s7, %s179_s7 }
  0x1f   : > { %p1229_p7 = scmp.ne.s32.totalorder %s179_s7, %s1228_s16  ;;  %p1237_p6 = scmp.lt.s32.totalorder %s1228_s16, %s1228_s16 }
  0x21   : > { %p1231_p8 = pnand %p1229_p7, %p1217_p0  ;;  %p1238_p5 = por %p1237_p6, %p1236_p9 }
  0x23   : > { %p1232_p11 = pneg %p1231_p8 }
  0x25   : > { %p1239_p10 = pnand %p1238_p5, %p1232_p11 }
  0x27   : > { %1242 = shalt.err (!%p1239_p10)
}
  0x28   : > { %s1312_s17 = smov 128   ;;  %s1313_s23 = smov 8  }
  0x29   : > { %1148 = dma.hbm_to_vmem [thread:$0]  (!%p1410_p12), %s1798_s3, 2048, %s179_s7, [#allocation3], %s1312_s17, %s1312_s17, %s1313_s23  }
  0x2a   : > { %p1808_p13 = scmp.ne.s32.totalorder %s1806_s30, 0 }
  0x2b   : > { %p1809_p1 = scmp.eq.s32.totalorder (!%p1808_p13), %s1374_s22, 0 }
  0x2c   : > { %206 = sbr.rel (%p1808_p13) target bundleno = 638 (0x27e), region = 40 }
  0x33   : > { %1288 = dma.done.wait (%p1809_p1), [#allocation3], 2048   ;;  %p1810_p0 = pmov %p1809_p1 }
  0x34   : > { %s974_s6 = sshll.u32 %s1374_s22, 2  ;;  %vm253_vm0 = vcmask 64512   ;;  %v245_v0 = vld [vmem:[%s1796_s1] sm:$0xff]  ;;  %v768_v6 = vld [vmem:[#allocation2 + $0x8] sm:$0xff]  ;;  %v769_v8 = vld [vmem:[#allocation2 + $0x10] sm:$0xff]  ;;  %s231_s14 = sand.u32 1, %s1301_s19  }
  0x35   : > { %1290 = vsyncadd (%p1810_p0), [#allocation3], 4294965248  ;;  %p235_p5 = scmp.lt.s32.totalorder %s974_s6, 7  ;;  %1029 = vmatprep.subr.mxu0 %v245_v0  ;;  %v767_v5 = vld [vmem:[#allocation2] sm:$0xff]  ;;  %v770_v9 = vld [vmem:[#allocation2 + $0x18] sm:$0xff]  ;;  %s973_s15 = sshll.u32 %s231_s14, 5 }
  0x36   : > { %1030 = vmatpush3.msra.mxu0 %v245_v0  ;;  %v1075_v7 = vpack.c.bf16 %v768_v6, %v767_v5  ;;  %v771_v10 = vld [vmem:[#allocation2 + $0x20] sm:$0xff]  ;;  %v1079_v11 = vpack.c.bf16 %v770_v9, %v769_v8  ;;  %v772_v12 = vld [vmem:[#allocation2 + $0x28] sm:$0xff]  ;;  %v773_v14 = vld [vmem:[#allocation2 + $0x30] sm:$0xff]  ;;  %v1314_v6 = vmov 683565275   ;;  %s233_s23 = scalar_lea.vmem [#allocation5], %s973_s15 }
  0x37   : > { %s1824_s6 = smov (!%p235_p5, %s974_s6), 7  ;;  %v1083_v13 = vpack.c.bf16 %v772_v12, %v771_v10  ;;  %v774_v15 = vld [vmem:[#allocation2 + $0x38] sm:$0xff]  ;;  %v775_v17 = vld [vmem:[#allocation2 + $0x40] sm:$0xff]  ;;  %v776_v18 = vld [vmem:[#allocation2 + $0x48] sm:$0xff]  ;;  %v1315_v8 = vmov 2475754826  }
  0x38   : > { %s975_s9 = sshll.u32 %s1824_s6, 3  ;;  %1076 = vmatprep.subr.bf16.mxu0 %v1075_v7  ;;  %1107 = vmatprep.subr.bf16.mxu1 %v1075_v7  ;;  %v1087_v16 = vpack.c.bf16 %v774_v15, %v773_v14  ;;  %v1091_v19 = vpack.c.bf16 %v776_v18, %v775_v17  ;;  %v777_v20 = vld [vmem:[#allocation2 + $0x50] sm:$0xff]  ;;  %v778_v21 = vld [vmem:[#allocation2 + $0x58] sm:$0xff]  ;;  %v779_v23 = vld [vmem:[#allocation2 + $0x60] sm:$0xff]  ;;  %v1318_v15 = vmov 920167782  }
  0x39   : > { %s238_s11 = scalar_lea.vmem %s1795_s0, %s975_s9  ;;  %1115 = vmatpush3.bf16.msra.mxu1 %v1075_v7  ;;  %v1095_v22 = vpack.c.bf16 %v778_v21, %v777_v20  ;;  %v780_v24 = vld [vmem:[#allocation2 + $0x68] sm:$0xff]  ;;  %v781_v26 = vld [vmem:[#allocation2 + $0x70] sm:$0xff]  ;;  %v782_v27 = vld [vmem:[#allocation2 + $0x78] sm:$0xff]  ;;  %s893_s25 = sshll.u32 %s233_s23, 4  ;;  %s1747_s25 = int_to_ptr.vmem [resolvable:$true] %s893_s25 }
  0x3a   : > { %v241_v1 = vld [vmem:[%s238_s11] sm:$0xff]  ;;  %v242_v2 = vld [vmem:[%s238_s11 + $0x8] sm:$0xff]  ;;  %v243_v3 = vld [vmem:[%s238_s11 + $0x10] sm:$0xff]  ;;  %1108 = vmatprep.subr.bf16.mxu1 %v1079_v11  ;;  %v1099_v25 = vpack.c.bf16 %v780_v24, %v779_v23  ;;  %v1103_v28 = vpack.c.bf16 %v782_v27, %v781_v26  ;;  %s1003_s26 = sshll.u32 %s1374_s22, 9  ;;  %s1754_s10 = scalar_lea.sflag [#allocation4], %s231_s14 }
  0x3b   : > { %1031 = vmatprep.mubr.msk.f32.mxu0 %vm253_vm0, %v241_v1  ;;  %v244_v4 = vld [vmem:[%s238_s11 + $0x18] sm:$0xff]  ;;  %v976_v29 = vld [vmem:[%s1797_s2] ss:$0 sm:$0xff]  ;;  %s1752_s8 = scalar_lea.hbm %s1800_s5, %s1003_s26  ;;  %s1243_s11 = scalar_lea.vmem %s1747_s25, 512 }
  0x3c   : > { %1032 = vmatmul.mubr.msk.f32.vlgmr.msra.gmra.mrb[0].mxu0 %vm253_vm0, %v242_v2  ;;  %p1244_p6 = scmp.ne.s32.totalorder %s1747_s25, %s1243_s11  ;;  %p1817_p9 = scmp.ne.s32.totalorder %s1804_s28, 0 }
  0x3d   : > { %1034 = vmatprep.mubr.msk.f32.mxu0 %vm253_vm0, %v243_v3  ;;  %1078 = vmatpush3.bf16.msra.mxu0 %v1075_v7  ;;  %s1320_s22 = smov [#allocation5]  }
  0x3e   : > { %1080 = vmatprep.subr.bf16.mxu0 %v1079_v11  ;;  %1116 = vmatpush3.bf16.msra.mxu1 %v1079_v11  ;;  %p1245_p10 = pnand %p1244_p6, %p1817_p9  ;;  %s1247_s7 = sshll.u32 %s1320_s22, 4  ;;  %s1248_s7 = int_to_ptr.vmem [resolvable:$false] %s1247_s7 }
  0x3f   : > { %1109 = vmatprep.subr.bf16.mxu1 %v1083_v13  ;;  %s1249_s12 = scalar_lea.vmem %s1248_s7, 1024  ;;  %p1250_p2 = scmp.lt.s32.totalorder %s1747_s25, %s1248_s7 }
  0x40   : > { %1035 = vmatmul.mubr.msk.f32.gmra.mrb[2].mxu0 %vm253_vm0, %v244_v4  ;;  %p1246_p12 = pneg %p1245_p10  ;;  %p1251_p3 = scmp.lt.s32.totalorder %s1249_s12, %s1243_s11 }
  0x41   : > { %1082 = vmatpush3.bf16.msra.mxu0 %v1079_v11  ;;  %v1316_v11 = vmov 2131351028  }
  0x42   : > { %1084 = vmatprep.subr.bf16.mxu0 %v1083_v13  ;;  %1117 = vmatpush3.bf16.msra.mxu1 %v1083_v13  ;;  %p1252_p4 = por %p1251_p3, %p1250_p2 }
  0x43   : > { %1110 = vmatprep.subr.bf16.mxu1 %v1087_v16 }
  0x44   : > { %p1253_p7 = pnand %p1252_p4, %p1246_p12 }
  0x45   : > { %1086 = vmatpush3.bf16.msra.mxu0 %v1083_v13  ;;  %v1317_v13 = vmov 2102212464  }
  0x46   : > { %1088 = vmatprep.subr.bf16.mxu0 %v1087_v16  ;;  %1118 = vmatpush3.bf16.msra.mxu1 %v1087_v16 }
  0x47   : > { %1111 = vmatprep.subr.bf16.mxu1 %v1091_v19 }
  0x49   : > { %1090 = vmatpush3.bf16.msra.mxu0 %v1087_v16 }
  0x4a   : > { %1092 = vmatprep.subr.bf16.mxu0 %v1091_v19  ;;  %1119 = vmatpush3.bf16.msra.mxu1 %v1091_v19 }
  0x4b   : > { %1112 = vmatprep.subr.bf16.mxu1 %v1095_v22 }
  0x4d   : > { %1094 = vmatpush3.bf16.msra.mxu0 %v1091_v19 }
  0x4e   : > { %1096 = vmatprep.subr.bf16.mxu0 %v1095_v22  ;;  %1120 = vmatpush3.bf16.msra.mxu1 %v1095_v22 }
  0x4f   : > { %1113 = vmatprep.subr.bf16.mxu1 %v1099_v25 }
  0x51   : > { %1098 = vmatpush3.bf16.msra.mxu0 %v1095_v22  ;;  %v1319_v22 = vmov 1326507024  }
  0x52   : > { %1100 = vmatprep.subr.bf16.mxu0 %v1099_v25  ;;  %1121 = vmatpush3.bf16.msra.mxu1 %v1099_v25 }
  0x53   : > { %1114 = vmatprep.subr.bf16.mxu1 %v1103_v28 }
  0x55   : > { %1102 = vmatpush3.bf16.msra.mxu0 %v1099_v25 }
  0x56   : > { %1104 = vmatprep.subr.bf16.mxu0 %v1103_v28  ;;  %1122 = vmatpush3.bf16.msra.mxu1 %v1103_v28 }
  0x59   : > { %1106 = vmatpush3.bf16.msra.mxu0 %v1103_v28 }
 0x10f   : > { %v1033_v30 = vpop.f32.mrb[0].mxu0 }
 0x110   : > { %v1446_v31 = vadd.f32 %v1033_v30, %v976_v29  ;;  %v332_v32 = vpop.f32.mrb[1].mxu0 }
 0x111   : > { %v1448_v33 = vadd.f32 %v976_v29, %v332_v32 }
 0x112   : > { %v455_v34 = vand.u32 2147483647, %v1446_v31  ;;  %v458_v35 = vand.u32 2139095040, %v1446_v31 }
 0x113   : > { %v351_v36 = vand.u32 2147483647, %v1448_v33  ;;  %v354_v37 = vand.u32 2139095040, %v1448_v33  ;;  %v1036_v38 = vpop.f32.mrb[2].mxu0 }
 0x114   : > { %v459_v39 = vshrl.u32 %v458_v35, 23  ;;  %v462_v40 = vand.u32 8388607, %v455_v34  ;;  %v1456_v41 = vadd.f32 %v1036_v38, %v976_v29  ;;  %v342_v42 = vpop.f32.mrb[3].mxu0 }
 0x115   : > { %v355_v43 = vshrl.u32 %v354_v37, 23  ;;  %v358_v44 = vand.u32 8388607, %v351_v36  ;;  %v1460_v45 = vadd.f32 %v976_v29, %v342_v42 }
 0x116   : > { %v985_v46 = vadd.s32 4294967169, %v459_v39  ;;  %v663_v47 = vand.u32 2147483647, %v1456_v41  ;;  %v463_v48 = vor.u32 8388608, %v462_v40  ;;  %v666_v50 = vand.u32 2139095040, %v1456_v41 }
 0x117   : > { %v981_v49 = vadd.s32 4294967169, %v355_v43  ;;  %v562_v51 = vand.u32 2139095040, %v1460_v45  ;;  %v359_v53 = vor.u32 8388608, %v358_v44 }
 0x118   : > { %v465_v52 = vadd.s32 1, %v985_v46  ;;  %v667_v55 = vshrl.u32 %v666_v50, 23  ;;  %v1467_v56 = vand.u32 8388607, %v663_v47  ;;  %v1469_v59 = vshll.u32 %v463_v48, 8 }
 0x119   : > { %v361_v54 = vadd.s32 1, %v981_v49  ;;  %v563_v57 = vshrl.u32 %v562_v51, 23  ;;  %v1471_v0 = vshll.u32 %v359_v53, 8 }
 0x11a   : > { %vm466_vm1 = vcmp.gt.s32.totalorder %v465_v52, 0  ;;  %v993_v60 = vadd.s32 4294967169, %v667_v55  ;;  %v671_v3 = vor.u32 8388608, %v1467_v56 }
 0x11b   : > { %v467_v58 = vsel %vm466_vm1, %v465_v52, 0  ;;  %vm362_vm2 = vcmp.gt.s32.totalorder %v361_v54, 0  ;;  %v1476_v4 = vadd.s32 4294967169, %v563_v57 }
 0x11c   : > { %v468_v61 = vshrl.u32 %v467_v58, 5  ;;  %v469_v62 = vand.u32 31, %v467_v58  ;;  %v363_v63 = vsel %vm362_vm2, %v361_v54, 0  ;;  %v1480_v10 = vadd.s32 1, %v993_v60 }
 0x11d   : > { %v1473_v1 = vshrl.u32 %v363_v63, 5  ;;  %v365_v2 = vand.u32 31, %v363_v63 }
 0x11e   : > { %v470_v5 = vsub.s32 32, %v469_v62  ;;  %v472_v7 = vshll.u32 %v1314_v6, %v469_v62  ;;  %v475_v9 = vshll.u32 %v1315_v8, %v469_v62  ;;  %v478_v12 = vshll.u32 %v1316_v11, %v469_v62 }
 0x11f   : > { %v481_v14 = vshll.u32 %v1317_v13, %v469_v62  ;;  %v484_v16 = vshll.u32 %v1318_v15, %v469_v62  ;;  %vm487_vm3 = vcmp.lt.s32.totalorder %v468_v61, 1  ;;  %vm488_vm4 = vcmp.lt.s32.totalorder %v468_v61, 2 }
 0x120   : > { %v473_v17 = vshrl.u32 %v1315_v8, %v470_v5  ;;  %v476_v18 = vshrl.u32 %v1316_v11, %v470_v5  ;;  %v479_v19 = vshrl.u32 %v1317_v13, %v470_v5  ;;  %v471_v20 = vshrl.u32 %v1314_v6, %v470_v5 }
 0x121   : > { %v482_v21 = vshrl.u32 %v1318_v15, %v470_v5  ;;  %v485_v23 = vshrl.u32 %v1319_v22, %v470_v5  ;;  %vm489_vm5 = vcmp.lt.s32.totalorder %v468_v61, 3  ;;  %v366_v27 = vsub.s32 32, %v365_v2 }
 0x122   : > { %v474_v24 = vor.u32 %v473_v17, %v472_v7  ;;  %v477_v25 = vor.u32 %v476_v18, %v475_v9  ;;  %v480_v26 = vor.u32 %v479_v19, %v478_v12  ;;  %vm490_vm6 = vcmp.lt.s32.totalorder %v468_v61, 4 }
 0x123   : > { %v483_v28 = vor.u32 %v482_v21, %v481_v14  ;;  %v486_v29 = vor.u32 %v485_v23, %v484_v16  ;;  %v368_v30 = vshll.u32 %v1314_v6, %v365_v2  ;;  %v371_v43 = vshll.u32 %v1315_v8, %v365_v2 }
 0x124   : > { %v491_v32 = vsel %vm487_vm3, %v471_v20, %v474_v24  ;;  %v492_v35 = vsel %vm490_vm6, %v480_v26, 2102212464  ;;  %v495_v37 = vsel %vm487_vm3, %v474_v24, %v477_v25  ;;  %v499_v38 = vsel %vm487_vm3, %v477_v25, %v480_v26 }
 0x125   : > { %v493_v39 = vsel %vm489_vm5, %v477_v25, %v492_v35  ;;  %v496_v40 = vsel %vm490_vm6, %v483_v28, 920167782  ;;  %v500_v42 = vsel %vm490_vm6, %v486_v29, 1326507024  ;;  %v367_v48 = vshrl.u32 %v1314_v6, %v366_v27 }
 0x126   : > { %v497_v44 = vsel %vm489_vm5, %v480_v26, %v496_v40  ;;  %v501_v46 = vsel %vm489_vm5, %v483_v28, %v500_v42  ;;  %v369_v49 = vshrl.u32 %v1315_v8, %v366_v27  ;;  %v494_v50 = vsel %vm488_vm4, %v491_v32, %v493_v39 }
 0x127   : > { %v498_v51 = vsel %vm488_vm4, %v495_v37, %v497_v44  ;;  %v502_v52 = vsel %vm488_vm4, %v499_v38, %v501_v46  ;;  %v372_v53 = vshrl.u32 %v1316_v11, %v366_v27  ;;  %v374_v63 = vshll.u32 %v1316_v11, %v365_v2 }
 0x128   : > { %v1506_v54 = vmul.u32.u64.low %v1469_v59, %v502_v52  ;;  %v1507_v55 = vmul.u32.u64.high %v1469_v59, %v502_v52, %v1506_v54  ;;  %v1510_v57 = vmul.u32.u64.low %v1469_v59, %v498_v51  ;;  %v1511_v58 = vmul.u32.u64.high %v1469_v59, %v498_v51, %v1510_v57 }
 0x129   : > { %v370_v60 = vor.u32 %v369_v49, %v368_v30  ;;  %v373_v62 = vor.u32 %v372_v53, %v371_v43  ;;  %v375_v5 = vshrl.u32 %v1317_v13, %v366_v27  ;;  %v510_v61 = vmul.u32 %v1469_v59, %v494_v50 }
 0x12a   : > { %v377_v7 = vshll.u32 %v1317_v13, %v365_v2  ;;  %v378_v9 = vshrl.u32 %v1318_v15, %v366_v27  ;;  %v381_v12 = vshrl.u32 %v1319_v22, %v366_v27  ;;  %v380_v16 = vshll.u32 %v1318_v15, %v365_v2 }
 0x12b   : > { %v376_v14 = vor.u32 %v375_v5, %v374_v63  ;;  %vm383_vm7 = vcmp.lt.s32.totalorder %v1473_v1, 1  ;;  %vm384_vm8 = vcmp.lt.s32.totalorder %v1473_v1, 2  ;;  %vm512_vm9 = vc.u32 %v1507_v55, %v1510_v57 }
 0x12c   : > { %v513_v17 = vadd.s32 1, %v1511_v58  ;;  %v379_v18 = vor.u32 %v378_v9, %v377_v7  ;;  %vm385_vm10 = vcmp.lt.s32.totalorder %v1473_v1, 3  ;;  %v382_v59 = vor.u32 %v381_v12, %v380_v16 }
 0x12d   : > { %vm386_vm11 = vcmp.lt.s32.totalorder %v1473_v1, 4  ;;  %v387_v19 = vsel %vm383_vm7, %v367_v48, %v370_v60  ;;  %v391_v20 = vsel %vm383_vm7, %v370_v60, %v373_v62  ;;  %v395_v24 = vsel %vm383_vm7, %v373_v62, %v376_v14 }
 0x12e   : > { %v514_v21 = vsel %vm512_vm9, %v513_v17, %v1511_v58  ;;  %v388_v2 = vsel %vm386_vm11, %v376_v14, 2102212464  ;;  %v392_v23 = vsel %vm386_vm11, %v379_v18, 920167782  ;;  %v396_v28 = vsel %vm386_vm11, %v382_v59, 1326507024 }
 0x12f   : > { %v515_v25 = vadd.s32 %v514_v21, %v510_v61  ;;  %v389_v26 = vsel %vm385_vm10, %v373_v62, %v388_v2  ;;  %v393_v27 = vsel %vm385_vm10, %v376_v14, %v392_v23  ;;  %v397_v32 = vsel %vm385_vm10, %v379_v18, %v396_v28 }
 0x130   : > { %v390_v29 = vsel %vm384_vm8, %v387_v19, %v389_v26  ;;  %v394_v30 = vsel %vm384_vm8, %v391_v20, %v393_v27  ;;  %vm674_vm12 = vcmp.gt.s32.totalorder %v1480_v10, 0  ;;  %v398_v37 = vsel %vm384_vm8, %v395_v24, %v397_v32 }
 0x131   : > { %v516_v35 = vadd.s32 536870912, %v515_v25  ;;  %v1537_v38 = vmul.u32.u64.low %v1471_v0, %v394_v30  ;;  %v1538_v39 = vmul.u32.u64.high %v1471_v0, %v394_v30, %v1537_v38  ;;  %v675_v43 = vsel %vm674_vm12, %v1480_v10, 0 }
 0x132   : > { %v1542_v40 = vmul.u32.u64.low %v1471_v0, %v398_v37  ;;  %v1543_v42 = vmul.u32.u64.high %v1471_v0, %v398_v37, %v1542_v40  ;;  %v569_v44 = vadd.s32 1, %v1476_v4  ;;  %v677_v48 = vand.u32 31, %v675_v43 }
 0x133   : > { %v1547_v46 = vshrl.u32 %v516_v35, 30  ;;  %v406_v49 = vmul.u32 %v1471_v0, %v390_v29  ;;  %v1552_v1 = vshll.u32 %v671_v3, 8  ;;  %v409_v51 = vadd.s32 1, %v1538_v39 }
 0x134   : > { %v676_v52 = vshrl.u32 %v675_v43, 5  ;;  %v678_v53 = vsub.s32 32, %v677_v48  ;;  %vm408_vm13 = vc.u32 %v1543_v42, %v1537_v38  ;;  %v680_v4 = vshll.u32 %v1314_v6, %v677_v48 }
 0x135   : > { %v518_v50 = vshll.u32 %v1547_v46, 30  ;;  %v683_v10 = vshll.u32 %v1315_v8, %v677_v48  ;;  %vm570_vm14 = vcmp.gt.s32.totalorder %v569_v44, 0  ;;  %v410_v0 = vsel %vm408_vm13, %v409_v51, %v1538_v39 }
 0x136   : > { %v681_v56 = vshrl.u32 %v1315_v8, %v678_v53  ;;  %v686_v3 = vshll.u32 %v1316_v11, %v677_v48  ;;  %v411_v58 = vadd.s32 %v410_v0, %v406_v49  ;;  %v684_v60 = vshrl.u32 %v1316_v11, %v678_v53 }
 0x137   : > { %v519_v54 = vsub.s32 %v515_v25, %v518_v50  ;;  %v687_v62 = vshrl.u32 %v1317_v13, %v678_v53  ;;  %v689_v63 = vshll.u32 %v1317_v13, %v677_v48  ;;  %v690_v7 = vshrl.u32 %v1318_v15, %v678_v53 }
 0x138   : > { %v682_v61 = vor.u32 %v681_v56, %v680_v4  ;;  %v692_v9 = vshll.u32 %v1318_v15, %v677_v48  ;;  %v412_v12 = vadd.s32 536870912, %v411_v58  ;;  %v685_v14 = vor.u32 %v684_v60, %v683_v10 }
 0x139   : > { %v521_v5 = vsub.s32 0, %v519_v54  ;;  %v688_v16 = vor.u32 %v687_v62, %v686_v3  ;;  %v693_v17 = vshrl.u32 %v1319_v22, %v678_v53  ;;  %v679_v59 = vshrl.u32 %v1314_v6, %v678_v53 }
 0x13a   : > { %v691_v19 = vor.u32 %v690_v7, %v689_v63  ;;  %v1571_v20 = vsel %vm570_vm14, %v569_v44, 0  ;;  %v1573_v21 = vshrl.u32 %v412_v12, 30  ;;  %vm695_vm15 = vcmp.lt.s32.totalorder %v676_v52, 1 }
 0x13b   : > { %v986_v18 = vmin.u32 %v521_v5, %v519_v54  ;;  %v694_v2 = vor.u32 %v693_v17, %v692_v9  ;;  %vm698_vm0 = vcmp.lt.s32.totalorder %v676_v52, 4  ;;  %vm696_vm1 = vcmp.lt.s32.totalorder %v676_v52, 2 }
 0x13c   : > { %v700_v24 = vsel %vm698_vm0, %v688_v16, 2102212464  ;;  %v703_v25 = vsel %vm695_vm15, %v682_v61, %v685_v14  ;;  %v414_v26 = vshll.u32 %v1573_v21, 30  ;;  %vm697_vm2 = vcmp.lt.s32.totalorder %v676_v52, 3 }
 0x13d   : > { %v523_v23 = vclz %v986_v18  ;;  %v704_v27 = vsel %vm698_vm0, %v691_v19, 920167782  ;;  %v707_v28 = vsel %vm695_vm15, %v685_v14, %v688_v16  ;;  %v699_v30 = vsel %vm695_vm15, %v679_v59, %v682_v61 }
 0x13e   : > { %v705_v32 = vsel %vm697_vm2, %v688_v16, %v704_v27  ;;  %v708_v35 = vsel %vm698_vm0, %v694_v2, 1326507024  ;;  %v415_v37 = vsub.s32 %v411_v58, %v414_v26  ;;  %v701_v39 = vsel %vm697_vm2, %v685_v14, %v700_v24 }
 0x13f   : > { %v987_v29 = vadd.s32 4294967294, %v523_v23  ;;  %v706_v40 = vsel %vm696_vm1, %v703_v25, %v705_v32  ;;  %v709_v43 = vsel %vm697_vm2, %v691_v19, %v708_v35  ;;  %v511_v10 = vadd.s32 %v1510_v57, %v1507_v55 }
 0x140   : > { %v710_v44 = vsel %vm696_vm1, %v707_v28, %v709_v43  ;;  %v1579_v48 = vmul.u32.u64.low %v1552_v1, %v706_v40  ;;  %v1580_v49 = vmul.u32.u64.high %v1552_v1, %v706_v40, %v1579_v48  ;;  %v417_v51 = vsub.s32 0, %v415_v37 }
 0x141   : > { %vm988_vm3 = vcmp.lt.s32.totalorder %v987_v29, 0  ;;  %v1584_v53 = vmul.u32.u64.low %v1552_v1, %v710_v44  ;;  %v1585_v4 = vmul.u32.u64.high %v1552_v1, %v710_v44, %v1584_v53  ;;  %v702_v3 = vsel %vm696_vm1, %v699_v30, %v701_v39 }
 0x142   : > { %v526_v50 = vsel %vm988_vm3, 0, %v987_v29  ;;  %v982_v60 = vmin.u32 %v417_v51, %v415_v37  ;;  %v721_v5 = vadd.s32 1, %v1580_v49  ;;  %v1592_v61 = vand.u32 31, %v1571_v20 }
 0x143   : > { %v527_v0 = vsub.s32 32, %v526_v50  ;;  %v531_v56 = vsub.s32 4294967266, %v526_v50  ;;  %v528_v58 = vshll.u32 %v519_v54, %v526_v50  ;;  %v718_v9 = vmul.u32 %v1552_v1, %v702_v3 }
 0x144   : > { %v419_v7 = vclz %v982_v60  ;;  %vm720_vm4 = vc.u32 %v1585_v4, %v1579_v48  ;;  %vm457_vm5 = vcmp.lt.s32.totalorder %v1446_v31, 0  ;;  %v1600_v16 = vsub.s32 32, %v1592_v61 }
 0x145   : > { %v529_v62 = vshrl.u32 %v511_v10, %v527_v0  ;;  %v532_v63 = vadd.s32 127, %v531_v56  ;;  %v722_v52 = vsel %vm720_vm4, %v721_v5, %v1580_v49  ;;  %vm353_vm6 = vcmp.lt.s32.totalorder %v1448_v33, 0 }
 0x146   : > { %v983_v12 = vadd.s32 4294967294, %v419_v7  ;;  %v723_v54 = vadd.s32 %v722_v52, %v718_v9  ;;  %v541_v1 = vsub.s32 4, %v1547_v46  ;;  %vm1606_vm8 = vcmp.le.f32.partialorder %v455_v34, 0.7853982 }
 0x147   : > { %v530_v55 = vor.u32 %v529_v62, %v528_v58  ;;  %v533_v57 = vshll.u32 %v532_v63, 23  ;;  %v407_v23 = vadd.s32 %v1537_v38, %v1543_v42  ;;  %v586_v29 = vshrl.u32 %v1318_v15, %v1600_v16 }
 0x148   : > { %vm984_vm7 = vcmp.lt.s32.totalorder %v983_v12, 0  ;;  %v724_v17 = vadd.s32 536870912, %v723_v54  ;;  %v437_v34 = vsub.s32 4, %v1573_v21  ;;  %vm1620_vm9 = vcmp.le.f32.partialorder %v351_v36, 0.7853982 }
 0x149   : > { %v534_v14 = vor.u32 4788187, %v533_v57  ;;  %v537_v19 = vcvt.s32.f32 %v530_v55  ;;  %v422_v2 = vsel %vm984_vm7, 0, %v983_v12  ;;  %v542_v38 = vsel %vm457_vm5, %v541_v1, %v1547_v46 }
 0x14a   : > { %v423_v24 = vsub.s32 32, %v422_v2  ;;  %v427_v25 = vsub.s32 4294967266, %v422_v2  ;;  %v1612_v26 = vshrl.u32 %v724_v17, 30  ;;  %v424_v28 = vshll.u32 %v415_v37, %v422_v2 }
 0x14b   : > { %v535_v59 = vand.u32 2147483647, %v534_v14  ;;  %v1628_v37 = vshrl.u32 %v1571_v20, 5  ;;  %v585_v40 = vshll.u32 %v1317_v13, %v1592_v61  ;;  %v559_v43 = vand.u32 2147483647, %v1460_v45 }
 0x14c   : > { %v425_v30 = vshrl.u32 %v407_v23, %v423_v24  ;;  %v428_v32 = vadd.s32 127, %v427_v25  ;;  %v726_v35 = vshll.u32 %v1612_v26, 30  ;;  %v544_v36 = vsel %vm1606_vm8, 0, %v542_v38 }
 0x14d   : > { %v538_v27 = vmul.f32 %v537_v19, %v535_v59  ;;  %v588_v46 = vshll.u32 %v1318_v15, %v1592_v61  ;;  %v589_v20 = vshrl.u32 %v1319_v22, %v1600_v16  ;;  %v438_v53 = vsel %vm353_vm6, %v437_v34, %v1573_v21 }
 0x14e   : > { %v426_v44 = vor.u32 %v425_v30, %v424_v28  ;;  %v429_v49 = vshll.u32 %v428_v32, 23  ;;  %v1633_v50 = vsub.s32 %v723_v54, %v726_v35  ;;  %v587_v3 = vor.u32 %v586_v29, %v585_v40 }
 0x14f   : > { %v539_v42 = vxor.u32 2147483648, %v538_v27  ;;  %v548_v60 = vadd.s32 3, %v544_v36  ;;  %v577_v15 = vshrl.u32 %v1315_v8, %v1600_v16  ;;  %v576_v21 = vshll.u32 %v1314_v6, %v1592_v61 }
 0x150   : > { %v430_v0 = vor.u32 4788187, %v429_v49  ;;  %v729_v56 = vsub.s32 0, %v1633_v50  ;;  %v433_v58 = vcvt.s32.f32 %v426_v44  ;;  %v590_v63 = vor.u32 %v589_v20, %v588_v46 }
 0x151   : > { %v540_v51 = vsel %vm457_vm5, %v539_v42, %v538_v27  ;;  %vm594_vm10 = vcmp.lt.s32.totalorder %v1628_v37, 4  ;;  %v566_v5 = vand.u32 8388607, %v559_v43  ;;  %v579_v7 = vshll.u32 %v1315_v8, %v1592_v61 }
 0x152   : > { %v543_v10 = vsel %vm1606_vm8, %v1446_v31, %v540_v51  ;;  %v431_v22 = vand.u32 2147483647, %v430_v0  ;;  %v994_v62 = vmin.u32 %v729_v56, %v1633_v50  ;;  %v578_v57 = vor.u32 %v577_v15, %v576_v21 }
 0x153   : > { %1199 = vcosq.f32 %v543_v10  ;;  %v580_v52 = vshrl.u32 %v1316_v11, %v1600_v16  ;;  %v600_v12 = vsel %vm594_vm10, %v587_v3, 920167782  ;;  %v440_v54 = vsel %vm1620_vm9, 0, %v438_v53 }
 0x154   : > { %1201 = vsinq.f32 %v543_v10  ;;  %v434_v9 = vmul.f32 %v433_v58, %v431_v22  ;;  %v731_v55 = vclz %v994_v62  ;;  %v582_v14 = vshll.u32 %v1316_v11, %v1592_v61 }
 0x155   : > { %v583_v17 = vshrl.u32 %v1317_v13, %v1600_v16  ;;  %v549_v18 = vand.u32 3, %v548_v60  ;;  %v581_v59 = vor.u32 %v580_v52, %v579_v7  ;;  %v604_v19 = vsel %vm594_vm10, %v590_v63, 1326507024 }
 0x156   : > { %v435_v1 = vxor.u32 2147483648, %v434_v9  ;;  %v995_v8 = vadd.s32 4294967294, %v731_v55  ;;  %v567_v2 = vor.u32 8388608, %v566_v5  ;;  %vm591_vm11 = vcmp.lt.s32.totalorder %v1628_v37, 1 }
 0x157   : > { %v584_v23 = vor.u32 %v583_v17, %v582_v14  ;;  %v575_v11 = vshrl.u32 %v1314_v6, %v1600_v16  ;;  %vm593_vm12 = vcmp.lt.s32.totalorder %v1628_v37, 3  ;;  %v599_v13 = vsel %vm591_vm11, %v578_v57, %v581_v59 }
 0x158   : > { %v436_v24 = vsel %vm353_vm6, %v435_v1, %v434_v9  ;;  %vm996_vm13 = vcmp.lt.s32.totalorder %v995_v8, 0  ;;  %vm554_vm14 = vcmp.eq.s32.totalorder %v549_v18, 2  ;;  %vm592_vm15 = vcmp.lt.s32.totalorder %v1628_v37, 2 }
 0x159   : > { %v439_v61 = vsel %vm1620_vm9, %v1448_v33, %v436_v24  ;;  %v596_v25 = vsel %vm594_vm10, %v584_v23, 2102212464  ;;  %v601_v27 = vsel %vm593_vm12, %v584_v23, %v600_v12  ;;  %v605_v6 = vsel %vm593_vm12, %v587_v3, %v604_v19 }
 0x15a   : > { %1203 = vcosq.f32 %v439_v61  ;;  %v602_v28 = vsel %vm592_vm15, %v599_v13, %v601_v27  ;;  %v603_v29 = vsel %vm591_vm11, %v581_v59, %v584_v23  ;;  %v607_v34 = vshll.u32 %v567_v2, 8 }
 0x15b   : > { %1205 = vsinq.f32 %v439_v61  ;;  %v734_v32 = vsel %vm996_vm13, 0, %v995_v8  ;;  %v595_v39 = vsel %vm591_vm11, %v575_v11, %v578_v57  ;;  %v597_v38 = vsel %vm593_vm12, %v581_v59, %v596_v25 }
 0x15c   : > { %v606_v40 = vsel %vm592_vm15, %v603_v29, %v605_v6  ;;  %v1700_v44 = vmul.u32.u64.low %v607_v34, %v602_v28  ;;  %v1701_v49 = vmul.u32.u64.high %v607_v34, %v602_v28, %v1700_v44  ;;  %v444_v36 = vadd.s32 3, %v440_v54 }
 0x15d   : > { %v1200_v16 = vpop.eup %1199  ;;  %vm551_vm0 = vcmp.eq.s32.totalorder %v549_v18, 0  ;;  %vm550_vm1 = vcmp.lt.s32.totalorder %v549_v18, 2  ;;  %v1704_v20 = vmul.u32.u64.low %v607_v34, %v606_v40  ;;  %v1705_v53 = vmul.u32.u64.high %v607_v34, %v606_v40, %v1704_v20 }
 0x15e   : > { %v1202_v30 = vpop.eup %1201  ;;  %v555_v35 = vxor.u32 2147483648, %v1200_v16  ;;  %v739_v10 = vsub.s32 4294967266, %v734_v32  ;;  %vm547_vm2 = vweird.f32 %v1446_v31  ;;  %v598_v56 = vsel %vm592_vm15, %v595_v39, %v597_v38 }
 0x15f   : > { %v552_v42 = vxor.u32 2147483648, %v1202_v30  ;;  %v617_v58 = vadd.s32 1, %v1701_v49  ;;  %v445_v60 = vand.u32 3, %v444_v36  ;;  %v614_v15 = vmul.u32 %v607_v34, %v598_v56 }
 0x160   : > { %v556_v51 = vsel %vm554_vm14, %v555_v35, %v1202_v30  ;;  %vm616_vm3 = vc.u32 %v1705_v53, %v1700_v44  ;;  %v740_v62 = vadd.s32 127, %v739_v10  ;;  %v735_v9 = vsub.s32 32, %v734_v32 }
 0x161   : > { %v553_v46 = vsel %vm551_vm0, %v1200_v16, %v552_v42  ;;  %v618_v21 = vsel %vm616_vm3, %v617_v58, %v1701_v49  ;;  %vm450_vm4 = vcmp.eq.s32.totalorder %v445_v60, 2  ;;  %vm447_vm5 = vcmp.eq.s32.totalorder %v445_v60, 0 }
 0x162   : > { %v557_v0 = vsel %vm550_vm1, %v553_v46, %v556_v51  ;;  %v619_v7 = vadd.s32 %v618_v21, %v614_v15  ;;  %v719_v57 = vadd.s32 %v1579_v48, %v1585_v4  ;;  %v741_v52 = vshll.u32 %v740_v62, 23 }
 0x163   : > { %v558_v3 = vsel %vm547_vm2, nan, %v557_v0  ;;  %vm446_vm6 = vcmp.lt.s32.totalorder %v445_v60, 2  ;;  %vm443_vm7 = vweird.f32 %v1448_v33  ;;  %v736_v18 = vshll.u32 %v1633_v50, %v734_v32 }
 0x164   : > { %v1204_v22 = vpop.eup %1203  ;;  %v620_v55 = vadd.s32 536870912, %v619_v7  ;;  %v737_v17 = vshrl.u32 %v719_v57, %v735_v9  ;;  %v742_v59 = vor.u32 4788187, %v741_v52  ;;  %v615_v27 = vadd.s32 %v1700_v44, %v1705_v53 }
 0x165   : > { %v1206_v63 = vpop.eup %1205  ;;  %v451_v5 = vxor.u32 2147483648, %v1204_v22  ;;  %vm665_vm9 = vcmp.lt.s32.totalorder %v1456_v41, 0  ;;  %vm1723_vm10 = vcmp.le.f32.partialorder %v663_v47, 0.7853982  ;;  %v749_v44 = vsub.s32 4, %v1612_v26 }
 0x166   : > { %v448_v31 = vxor.u32 2147483648, %v1206_v63  ;;  %v621_v14 = vshrl.u32 %v620_v55, 30  ;;  %v738_v2 = vor.u32 %v737_v17, %v736_v18  ;;  %v743_v24 = vand.u32 2147483647, %v742_v59 }
 0x167   : > { %v452_v37 = vsel %vm450_vm4, %v451_v5, %v1206_v63  ;;  %v750_v47 = vsel %vm665_vm9, %v749_v44, %v1612_v26  ;;  %vm561_vm11 = vcmp.lt.s32.totalorder %v1460_v45, 0  ;;  %vm560_vm12 = vcmp.le.f32.partialorder %v559_v43, 0.7853982 }
 0x168   : > { %v449_v12 = vsel %vm447_vm5, %v1204_v22, %v448_v31  ;;  %v622_v8 = vshll.u32 %v621_v14, 30  ;;  %v745_v4 = vcvt.s32.f32 %v738_v2  ;;  %v645_v36 = vsub.s32 4, %v621_v14 }
 0x169   : > { %v453_v54 = vsel %vm446_vm6, %v449_v12, %v452_v37  ;;  %v752_v10 = vsel %vm1723_vm10, 0, %v750_v47  ;;  %vm651_vm3 = vweird.f32 %v1460_v45  ;;  %vm755_vm4 = vweird.f32 %v1456_v41 }
 0x16a   : > { %v454_v1 = vsel %vm443_vm7, nan, %v453_v54  ;;  %v623_v19 = vsub.s32 %v619_v7, %v622_v8  ;;  %v746_v13 = vmul.f32 %v745_v4, %v743_v24  ;;  %v646_v20 = vsel %vm561_vm11, %v645_v36, %v621_v14  ;;  %v997_v54 = vld [vmem:[%s1799_s4] ss:$0 sm:$0xff] }
 0x16b   : > { %1069 = vmatprep.mubr.f32.mxu0 %v454_v1  ;;  %v648_v0 = vsel %vm560_vm12, 0, %v646_v20  ;;  %v756_v56 = vadd.s32 3, %v752_v10 }
 0x16c   : > { %1070 = vmatmul.mubr.f32.vlgmr.msra.gmra.mrb[4].mxu0 %v558_v3  ;;  %v625_v23 = vsub.s32 0, %v623_v19  ;;  %v747_v33 = vxor.u32 2147483648, %v746_v13  ;;  %v652_v60 = vadd.s32 3, %v648_v0 }
 0x16d   : > { %v757_v26 = vand.u32 3, %v756_v56 }
 0x16e   : > { %v990_v48 = vmin.u32 %v625_v23, %v623_v19  ;;  %v748_v34 = vsel %vm665_vm9, %v747_v33, %v746_v13  ;;  %v653_v62 = vand.u32 3, %v652_v60 }
 0x16f   : > { %v751_v38 = vsel %vm1723_vm10, %v1456_v41, %v748_v34  ;;  %vm759_vm13 = vcmp.eq.s32.totalorder %v757_v26, 0  ;;  %vm762_vm14 = vcmp.eq.s32.totalorder %v757_v26, 2  ;;  %vm758_vm1 = vcmp.lt.s32.totalorder %v757_v26, 2 }
 0x170   : > { %v627_v11 = vclz %v990_v48  ;;  %1207 = vcosq.f32 %v751_v38  ;;  %vm658_vm15 = vcmp.eq.s32.totalorder %v653_v62, 2  ;;  %vm655_vm0 = vcmp.eq.s32.totalorder %v653_v62, 0 }
 0x171   : > { %1209 = vsinq.f32 %v751_v38  ;;  %vm654_vm2 = vcmp.lt.s32.totalorder %v653_v62, 2 }
 0x172   : > { %v991_v61 = vadd.s32 4294967294, %v627_v11 }
 0x174   : > { %vm992_vm8 = vcmp.lt.s32.totalorder %v991_v61, 0 }
 0x175   : > { %v630_v25 = vsel %vm992_vm8, 0, %v991_v61 }
 0x176   : > { %v631_v6 = vsub.s32 32, %v630_v25  ;;  %v635_v16 = vsub.s32 4294967266, %v630_v25  ;;  %v632_v50 = vshll.u32 %v623_v19, %v630_v25 }
 0x178   : > { %v633_v28 = vshrl.u32 %v615_v27, %v631_v6  ;;  %v636_v29 = vadd.s32 127, %v635_v16 }
 0x17a   : > { %v634_v30 = vor.u32 %v633_v28, %v632_v50  ;;  %v637_v32 = vshll.u32 %v636_v29, 23  ;;  %v1208_v3 = vpop.eup %1207 }
 0x17b   : > { %v1210_v58 = vpop.eup %1209  ;;  %v763_v22 = vxor.u32 2147483648, %v1208_v3 }
 0x17c   : > { %v638_v39 = vor.u32 4788187, %v637_v32  ;;  %v641_v40 = vcvt.s32.f32 %v634_v30  ;;  %v760_v15 = vxor.u32 2147483648, %v1210_v58 }
 0x17d   : > { %v764_v7 = vsel %vm762_vm14, %v763_v22, %v1210_v58 }
 0x17e   : > { %v639_v42 = vand.u32 2147483647, %v638_v39  ;;  %v761_v5 = vsel %vm759_vm13, %v1208_v3, %v760_v15 }
 0x17f   : > { %v765_v55 = vsel %vm758_vm1, %v761_v5, %v764_v7 }
 0x180   : > { %v642_v49 = vmul.f32 %v641_v40, %v639_v42  ;;  %v766_v12 = vsel %vm755_vm4, nan, %v765_v55 }
 0x182   : > { %v643_v51 = vxor.u32 2147483648, %v642_v49 }
 0x184   : > { %v644_v46 = vsel %vm561_vm11, %v643_v51, %v642_v49 }
 0x185   : > { %v647_v53 = vsel %vm560_vm12, %v1460_v45, %v644_v46 }
 0x186   : > { %1211 = vcosq.f32 %v647_v53 }
 0x187   : > { %1213 = vsinq.f32 %v647_v53 }
 0x190   : > { %v1212_v21 = vpop.eup %1211 }
 0x191   : > { %v1214_v43 = vpop.eup %1213  ;;  %v659_v63 = vxor.u32 2147483648, %v1212_v21 }
 0x192   : > { %v656_v9 = vxor.u32 2147483648, %v1214_v43 }
 0x193   : > { %v660_v31 = vsel %vm658_vm15, %v659_v63, %v1214_v43 }
 0x194   : > { %v657_v37 = vsel %vm655_vm0, %v1212_v21, %v656_v9 }
 0x195   : > { %v661_v57 = vsel %vm654_vm2, %v657_v37, %v660_v31 }
 0x196   : > { %v662_v52 = vsel %vm651_vm3, nan, %v661_v57 }
 0x197   : > { %1072 = vmatprep.mubr.f32.mxu1 %v662_v52 }
 0x198   : > { %1073 = vmatmul.mubr.f32.vlgmr.msra.gmra.mrb[0].mxu1 %v766_v12 }
 0x23f   : > { %v1071_v14 = vpop.f32.mrb[4].mxu0 }
 0x240   : > { %v862_v17 = vadd.f32 %v1071_v14, %v997_v54  ;;  %v856_v1 = vpop.f32.mrb[5].mxu0 }
 0x241   : > { %v857_v8 = vadd.f32 %v997_v54, %v856_v1 }
 0x242   : > { %876 = vst [vmem:[%s233_s23 + $0x8] sm:$0xff] %v862_v17 }
 0x243   : > { %875 = vst [vmem:[%s233_s23] sm:$0xff] %v857_v8 }
 0x26b   : > { %v1074_v41 = vpop.f32.mrb[0].mxu1 }
 0x26c   : > { %v872_v45 = vadd.f32 %v1074_v41, %v997_v54  ;;  %v866_v18 = vpop.f32.mrb[1].mxu1 }
 0x26d   : > { %v867_v59 = vadd.f32 %v997_v54, %v866_v18 }
 0x26e   : > { %878 = vst [vmem:[%s233_s23 + $0x18] sm:$0xff] %v872_v45 }
 0x26f   : > { %877 = vst [vmem:[%s233_s23 + $0x10] sm:$0xff] %v867_v59 }
 0x270   : > { %1256 = shalt.err (!%p1253_p7)
}
 0x271   : > { %s1257_s30 = scalar_lea.hbm %s1752_s8, 512  ;;  %s1261_s15 = scalar_lea.hbm %s1800_s5, 1024 }
 0x272   : > { %p1258_p8 = scmp.ne.s32.totalorder %s1752_s8, %s1257_s30  ;;  %p1262_p1 = scmp.lt.u32.totalorder %s1752_s8, %s1800_s5 }
 0x273   : > { %p1263_p0 = scmp.lt.u32.totalorder %s1261_s15, %s1257_s30  ;;  %p1265_p6 = scmp.lt.u32.totalorder %s1257_s30, %s1752_s8 }
 0x274   : > { %p1259_p11 = pnand %p1258_p8, %p1817_p9 }
 0x275   : > { %p1264_p5 = por %p1263_p0, %p1262_p1 }
 0x276   : > { %p1260_p13 = pneg %p1259_p11 }
 0x277   : > { %p1266_p10 = por %p1265_p6, %p1264_p5 }
 0x279   : > { %p1267_p12 = pnand %p1266_p10, %p1260_p13 }
 0x27b   : > { %1270 = shalt.err (!%p1267_p12)
}
 0x27c   : > { %s1321_s23 = smov 128   ;;  %s1322_s26 = smov 8  }
 0x27d   : > { %1143 = dma.vmem_to_hbm [thread:$0]  (%p1817_p9), %s1747_s25, 512, %s1752_s8, %s1754_s10, %s1321_s23, %s1321_s23, %s1322_s26  }
 0x27e PF: > { %p1155_p2 = scmp.ge.s32.totalorder %s1309_s21, 2  ;;  %s908_s6 = sand.u32 1, %s1297_s18  }
 0x27f   : > { %p1818_p3 = scmp.ne.s32.totalorder %s1805_s29, 0  ;;  %s909_s9 = scalar_lea.sflag [#allocation4], %s908_s6 }
 0x281   : > { %p1150_p4 = pnand %p1155_p2, %p1818_p3 }
 0x283   : > { %1292 = dma.done.wait (!%p1150_p4), %s909_s9, 512  }
 0x284   : > { %1294 = vsyncadd (!%p1150_p4), %s909_s9, 4294966784  ;;  %p16_p7 = scmp.ge.s32.totalorder %s1378_s24, 4   ;;  %s1819_s18 = smov %s1301_s19 }
 0x285   : > { %s1820_s19 = smov %s1305_s20  ;;  %s1821_s20 = smov %s1389_s27 }
 0x286   : > { %s1822_s21 = smov %s1378_s24  ;;  %18 = sbr.rel (!%p16_p7) target bundleno = 4 (0x4), region = 80 }
 0x28d   :  { %914 = vsyncpa [#allocation3], 1 }
 0x28e   :  { %916 = vsyncpa [#allocation3 + $0x1], 1 }
 0x28f   :  { %917 = vsyncpa [#allocation4], 1 }
 0x290   :  { %919 = vsyncpa [#allocation4 + $0x1], 1 }

</bundles_post_ra>
